<compile_context>
chip_gen: v7x
topology: tpu7x:2x2x1
jax: 0.10.0
libtpu: 0.0.40
codegen_flags: <defaults>
</compile_context>

<pallas_src>
import jax
import jax.numpy as jnp
from jax.experimental import pallas as pl
from jax.experimental.pallas import tpu as pltpu


def _round_up(a: int, b: int) -> int:
    return ((a + b - 1) // b) * b


def _fraud_gnn_kernel(x_ref, w1_ref, b1_ref, w2_ref, b2_ref, o_ref):
    # Layer 1 (packed): [R, P*in] @ [P*in, P*hid], lane-dense K, single MXU matmul.
    # astype is a no-op in the default f32 path; casts to bf16 if w1 was packed bf16.
    a = x_ref[...].astype(w1_ref.dtype)
    h = jnp.dot(a, w1_ref[...], preferred_element_type=jnp.float32)
    h = jnp.maximum(h + b1_ref[...], 0.0)          # bias + ReLU on the VPU

    # Layer 2: one MXU matmul against the block-diagonal [P*hid, P] fc2 weight
    # (replaces v1's per-slot lane slices + XLU reduces + concatenate).
    s = jnp.dot(h, w2_ref[...], preferred_element_type=jnp.float32)

    b2 = b2_ref[0]                                  # scalar bias from SMEM
    # Packed output: column p of row r is the score of sample r*P + p.
    o_ref[...] = (s + b2).astype(o_ref.dtype)


def fraud_gnn_forward(x, w1, b1, w2, b2, *,
                      max_tile_rows=4096, min_tile_rows=2048, compute_dtype=None):
    """x: [N, input_dim] f32.  Returns [N] f32 (matches the module's squeeze(-1))."""
    n, in_dim = x.shape
    hid = w1.shape[1]
    if n == 0:
        return jnp.zeros((0,), x.dtype)

    # How many samples fit in one 128-lane row.
    pack = 128 // in_dim if (in_dim <= 128 and 128 % in_dim == 0) else 1

    rem = n % pack
    if rem:
        # TODO(synk): a ragged (N % pack != 0) batch still pays one extra HBM pass
        # for this small pad; batches that are multiples of `pack` take the
        # zero-copy (bitcast reshape) path below.
        x = jnp.pad(x, ((0, pack - rem), (0, 0)))
    n_rows = x.shape[0] // pack
    xp = x.reshape(n_rows, pack * in_dim)           # free row-major bitcast

    # Tile sizing: large tiles (1-2 MiB of x) amortize the ~0.35us/grid-step
    # overhead; derive from N so the grid keeps ~8 steps when possible (v7x
    # megacore + pipeline overlap); never exceed the sublane-rounded problem.
    want = _round_up(max(pl.cdiv(n_rows, 8), 1), 8)
    tile_rows = int(min(max_tile_rows, max(min_tile_rows, want), _round_up(n_rows, 8)))
    grid_steps = pl.cdiv(n_rows, tile_rows)         # trailing tile may be partial

    # One-time weight packing (wrapper-side layout plumbing; VMEM-resident).
    w1p = jnp.kron(jnp.eye(pack, dtype=w1.dtype), w1)                    # [P*in, P*hid]
    if compute_dtype is not None:
        w1p = w1p.astype(compute_dtype)             # e.g. bf16 on v5e (MXU relief)
    b1p = jnp.tile(b1.reshape(1, hid), (1, pack))                        # [1, P*hid]
    w2blk = jnp.kron(jnp.eye(pack, dtype=w2.dtype), w2.reshape(hid, 1))  # [P*hid, P]
    b2s = jnp.asarray(b2, jnp.float32).reshape(1)                        # SMEM scalar

    out = pl.pallas_call(
        _fraud_gnn_kernel,
        out_shape=jax.ShapeDtypeStruct((n_rows, pack), jnp.float32),
        grid=(grid_steps,),
        in_specs=[
            # Streamed, double-buffered x tiles.
            pl.BlockSpec((tile_rows, pack * in_dim), lambda i: (i, 0)),
            # Weights/biases: constant index_map -> loaded once, stay resident.
            pl.BlockSpec((pack * in_dim, pack * hid), lambda i: (0, 0)),
            pl.BlockSpec((1, pack * hid), lambda i: (0, 0)),
            pl.BlockSpec((pack * hid, pack), lambda i: (0, 0)),
            # Scalar fc2 bias in SMEM.
            pl.BlockSpec(memory_space=pltpu.MemorySpace.SMEM),
        ],
        out_specs=pl.BlockSpec((tile_rows, pack), lambda i: (i, 0)),
        compiler_params=pltpu.CompilerParams(
            dimension_semantics=("parallel",),       # megacore sharding on v7x
            vmem_limit_bytes=32 * 1024 * 1024,       # safe on v7x's 64 MiB VMEM
        ),
    )(xp, w1p, b1p, w2blk, b2s)

    # Row-major unpack: element (r, p) is sample r*pack + p; slice drops pad rows.
    return out.reshape(-1)[:n]


def reference_forward(x, w1, b1, w2, b2):
    h = jnp.maximum(x @ w1 + b1, 0.0)
    return (h @ w2 + b2)[:, 0]


if __name__ == "__main__":
    # Small shapes consistent with the module's forward.
    N, INPUT_DIM, HIDDEN_DIM = 64, 16, 32

    key = jax.random.PRNGKey(0)
    kx, kw1, kb1, kw2, kb2 = jax.random.split(key, 5)

    x = jax.random.normal(kx, (N, INPUT_DIM), dtype=jnp.float32)
    w1 = jax.random.normal(kw1, (INPUT_DIM, HIDDEN_DIM), dtype=jnp.float32) * 0.1
    b1 = jax.random.normal(kb1, (1, HIDDEN_DIM), dtype=jnp.float32) * 0.1
    w2 = jax.random.normal(kw2, (HIDDEN_DIM, 1), dtype=jnp.float32) * 0.1
    b2 = jax.random.normal(kb2, (1, 1), dtype=jnp.float32) * 0.1

    # Check 1: single-tile, exactly divisible (zero-copy packed path).
    y = fraud_gnn_forward(x, w1, b1, w2, b2)
    jax.block_until_ready(y)
    y_ref = reference_forward(x, w1, b1, w2, b2)
    assert y.shape == (N,)
    assert jnp.allclose(y, y_ref, atol=1e-5, rtol=1e-5)

    # Check 2: multiple grid steps + partial trailing tile + ragged N (pad path).
    N2 = 3001
    x2 = jax.random.normal(jax.random.PRNGKey(1), (N2, INPUT_DIM), dtype=jnp.float32)
    y2 = fraud_gnn_forward(x2, w1, b1, w2, b2, min_tile_rows=64, max_tile_rows=64)
    jax.block_until_ready(y2)
    y2_ref = reference_forward(x2, w1, b1, w2, b2)
    assert y2.shape == (N2,)
    assert jnp.allclose(y2, y2_ref, atol=1e-4, rtol=1e-4)

    # Check 3: larger divisible N with default (large, N-derived) tiles.
    N3 = 32768
    x3 = jax.random.normal(jax.random.PRNGKey(2), (N3, INPUT_DIM), dtype=jnp.float32)
    y3 = fraud_gnn_forward(x3, w1, b1, w2, b2)
    jax.block_until_ready(y3)
    y3_ref = reference_forward(x3, w1, b1, w2, b2)
    assert y3.shape == (N3,)
    assert jnp.allclose(y3, y3_ref, atol=1e-4, rtol=1e-4)

    print("KERNEL_OK")
</pallas_src>

<mosaic_0001>
module attributes {stable_mosaic.version = 11 : i64} {
  func.func @_fraud_gnn_kernel(%arg0: i32, %arg1: memref<8x128xf32, #tpu.memory_space<vmem>>, %arg2: memref<128x256xf32, #tpu.memory_space<vmem>>, %arg3: memref<1x256xf32, #tpu.memory_space<vmem>>, %arg4: memref<256x8xf32, #tpu.memory_space<vmem>>, %arg5: memref<1xf32, #tpu.memory_space<smem>>, %arg6: memref<8x8xf32, #tpu.memory_space<vmem>>) attributes {dimension_semantics = [#tpu.dimension_semantics<parallel>], iteration_bounds = array<i64: 1>, scalar_prefetch = 0 : i64, scratch_operands = 0 : i64, tpu.core_type = #tpu.core_type<tc>, window_params = [{transform_indices = @transform_0, window_bounds = array<i64: 8, 128>}, {pipeline_mode = #tpu.pipeline_mode<synchronous>, transform_indices = @transform_1, window_bounds = array<i64: 128, 256>}, {pipeline_mode = #tpu.pipeline_mode<synchronous>, transform_indices = @transform_2, window_bounds = array<i64: 1, 256>}, {pipeline_mode = #tpu.pipeline_mode<synchronous>, transform_indices = @transform_3, window_bounds = array<i64: 256, 8>}, {transform_indices = @transform_4, window_bounds = array<i64: 1>}, {transform_indices = @transform_5, window_bounds = array<i64: 8, 8>}]} {
    %c0 = arith.constant 0 : index
    %c0_0 = arith.constant 0 : index
    %0 = vector.load %arg1[%c0, %c0_0] : memref<8x128xf32, #tpu.memory_space<vmem>>, vector<8x128xf32>
    %c0_1 = arith.constant 0 : index
    %c0_2 = arith.constant 0 : index
    %1 = vector.load %arg2[%c0_1, %c0_2] : memref<128x256xf32, #tpu.memory_space<vmem>>, vector<128x256xf32>
    %cst = arith.constant dense<0.000000e+00> : vector<8x256xf32>
    %2 = tpu.matmul %0, %1, %cst {dimension_numbers = #tpu.dot_dimension_numbers<[1], [0], [0], [1], [0, 0, 1, 1], [], []>} : vector<8x128xf32>, vector<128x256xf32>, vector<8x256xf32> -> vector<8x256xf32>
    %c0_3 = arith.constant 0 : index
    %c0_4 = arith.constant 0 : index
    %3 = vector.load %arg3[%c0_3, %c0_4] : memref<1x256xf32, #tpu.memory_space<vmem>>, vector<1x256xf32>
    %4 = vector.broadcast %3 : vector<1x256xf32> to vector<8x256xf32>
    %5 = arith.addf %2, %4 : vector<8x256xf32>
    %cst_5 = arith.constant 0.000000e+00 : f32
    %6 = vector.broadcast %cst_5 : f32 to vector<8x256xf32>
    %7 = arith.maximumf %5, %6 : vector<8x256xf32>
    %c0_6 = arith.constant 0 : index
    %c0_7 = arith.constant 0 : index
    %8 = vector.load %arg4[%c0_6, %c0_7] : memref<256x8xf32, #tpu.memory_space<vmem>>, vector<256x8xf32>
    %cst_8 = arith.constant dense<0.000000e+00> : vector<8x8xf32>
    %9 = tpu.matmul %7, %8, %cst_8 {dimension_numbers = #tpu.dot_dimension_numbers<[1], [0], [0], [1], [0, 0, 1, 1], [], []>} : vector<8x256xf32>, vector<256x8xf32>, vector<8x8xf32> -> vector<8x8xf32>
    %c0_9 = arith.constant 0 : index
    %10 = memref.load %arg5[%c0_9] : memref<1xf32, #tpu.memory_space<smem>>
    %11 = vector.broadcast %10 : f32 to vector<8x8xf32>
    %12 = arith.addf %9, %11 : vector<8x8xf32>
    %c0_10 = arith.constant 0 : index
    %c0_11 = arith.constant 0 : index
    %13 = vector.load %arg6[%c0_10, %c0_11] : memref<8x8xf32, #tpu.memory_space<vmem>>, vector<8x8xf32>
    tpu.vector_store %arg6[%c0_10, %c0_11], %12 {strides = array<i32>} : memref<8x8xf32, #tpu.memory_space<vmem>>, vector<8x8xf32>,
    return
  }
  func.func @transform_0(%arg0: i32) -> (i32, i32) {
    %c0_i32 = arith.constant 0 : i32
    %c0_i32_0 = arith.constant 0 : i32
    return %arg0, %c0_i32 : i32, i32
  }
  func.func @transform_1(%arg0: i32) -> (i32, i32) {
    %c0_i32 = arith.constant 0 : i32
    %c0_i32_0 = arith.constant 0 : i32
    %c0_i32_1 = arith.constant 0 : i32
    return %c0_i32, %c0_i32_0 : i32, i32
  }
  func.func @transform_2(%arg0: i32) -> (i32, i32) {
    %c0_i32 = arith.constant 0 : i32
    %c0_i32_0 = arith.constant 0 : i32
    %c0_i32_1 = arith.constant 0 : i32
    return %c0_i32, %c0_i32_0 : i32, i32
  }
  func.func @transform_3(%arg0: i32) -> (i32, i32) {
    %c0_i32 = arith.constant 0 : i32
    %c0_i32_0 = arith.constant 0 : i32
    %c0_i32_1 = arith.constant 0 : i32
    return %c0_i32, %c0_i32_0 : i32, i32
  }
  func.func @transform_4(%arg0: i32) -> i32 {
    %c0_i32 = arith.constant 0 : i32
    %c0_i32_0 = arith.constant 0 : i32
    return %c0_i32 : i32
  }
  func.func @transform_5(%arg0: i32) -> (i32, i32) {
    %c0_i32 = arith.constant 0 : i32
    %c0_i32_0 = arith.constant 0 : i32
    return %arg0, %c0_i32 : i32, i32
  }
}

</mosaic_0001>

<bundles_post_ra>
// kernel: tpu_custom_call.1
= control target key start
LH: loop header
LB: loop body
LE: loop exit
PB: predicated region body
PF: predicated region fallthrough
CT: control target
= control target key end

     0   :  { %v385_v7 = vmov 0.0   ;;  %s630_s0 = inlined_call_operand.vmem [shape: f32[8,128], index: 0, kind: input, shape index: {}]   ;;  %s631_s1 = inlined_call_operand.vmem [shape: f32[128,256], index: 1, kind: input, shape index: {}]   ;;  %s632_s2 = inlined_call_operand.vmem [shape: f32[1,256], index: 2, kind: input, shape index: {}]   ;;  %s633_s3 = inlined_call_operand.vmem [shape: f32[256,8], index: 3, kind: input, shape index: {}]   ;;  %s634_s4 = inlined_call_operand.<no memory space> [shape: f32[1], index: 4, kind: input, shape index: {}]   ;;  %s635_s5 = inlined_call_operand.hbm [shape: f32[8,8], index: 5, kind: output, shape index: {}]  }
   0x1   :  { %v24_v0 = vld [vmem:[%s631_s1 + $0x8] sm:$0xff]  ;;  %v26_v1 = vld [vmem:[%s631_s1 + $0x18] sm:$0xff]  ;;  %v23_v2 = vld [vmem:[%s631_s1] sm:$0xff]  ;;  %131 = vmatprep.mubr.f32.mxu0 %v385_v7 }
   0x2   :  { %v295_v3 = vpack.c.bf16 %v26_v1, %v24_v0  ;;  %v25_v4 = vld [vmem:[%s631_s1 + $0x10] sm:$0xff]  ;;  %v28_v5 = vld [vmem:[%s631_s1 + $0x28] sm:$0xff]  ;;  %v30_v6 = vld [vmem:[%s631_s1 + $0x38] sm:$0xff] }
   0x3   :  { %v297_v8 = vpack.c.bf16 %v25_v4, %v23_v2  ;;  %v299_v9 = vpack.c.bf16 %v30_v6, %v28_v5  ;;  %v27_v10 = vld [vmem:[%s631_s1 + $0x20] sm:$0xff]  ;;  %v29_v11 = vld [vmem:[%s631_s1 + $0x30] sm:$0xff]  ;;  %v32_v12 = vld [vmem:[%s631_s1 + $0x48] sm:$0xff] }
   0x4   :  { %296 = vmatprep.subr.bf16.mxu0 %v295_v3  ;;  %v34_v13 = vld [vmem:[%s631_s1 + $0x58] sm:$0xff]  ;;  %v301_v14 = vpack.c.bf16 %v29_v11, %v27_v10  ;;  %v31_v16 = vld [vmem:[%s631_s1 + $0x40] sm:$0xff]  ;;  %v33_v17 = vld [vmem:[%s631_s1 + $0x50] sm:$0xff] }
   0x5   :  { %298 = vmatpush1.bf16.msra.mxu0 %v297_v8  ;;  %v303_v15 = vpack.c.bf16 %v34_v13, %v32_v12  ;;  %v36_v18 = vld [vmem:[%s631_s1 + $0x68] sm:$0xff]  ;;  %v38_v19 = vld [vmem:[%s631_s1 + $0x78] sm:$0xff]  ;;  %v305_v20 = vpack.c.bf16 %v33_v17, %v31_v16  ;;  %v35_v22 = vld [vmem:[%s631_s1 + $0x60] sm:$0xff] }
   0x6   :  { %300 = vmatprep.subr.bf16.mxu0 %v299_v9  ;;  %v307_v21 = vpack.c.bf16 %v38_v19, %v36_v18  ;;  %v37_v23 = vld [vmem:[%s631_s1 + $0x70] sm:$0xff]  ;;  %v40_v24 = vld [vmem:[%s631_s1 + $0x88] sm:$0xff]  ;;  %v42_v25 = vld [vmem:[%s631_s1 + $0x98] sm:$0xff] }
   0x7   :  { %v39_v26 = vld [vmem:[%s631_s1 + $0x80] sm:$0xff]  ;;  %v41_v27 = vld [vmem:[%s631_s1 + $0x90] sm:$0xff]  ;;  %v157_v29 = vld [vmem:[%s633_s3 + $0x88] sm:$0xff]  ;;  %v309_v31 = vpack.c.bf16 %v37_v23, %v35_v22  ;;  %v311_v36 = vpack.c.bf16 %v42_v25, %v40_v24 }
   0x8   :  { %v156_v28 = vld [vmem:[%s633_s3 + $0x80] sm:$0xff]  ;;  %v141_v33 = vld [vmem:[%s633_s3 + $0x8] sm:$0xff]  ;;  %v158_v34 = vld [vmem:[%s633_s3 + $0x90] sm:$0xff]  ;;  %v313_v46 = vpack.c.bf16 %v41_v27, %v39_v26 }
   0x9   :  { %302 = vmatpush1.bf16.msra.mxu0 %v301_v14  ;;  %v140_v30 = vld [vmem:[%s633_s3] sm:$0xff]  ;;  %v327_v32 = vpack.c.bf16 %v157_v29, %v156_v28  ;;  %v159_v35 = vld [vmem:[%s633_s3 + $0x98] sm:$0xff]  ;;  %v142_v39 = vld [vmem:[%s633_s3 + $0x10] sm:$0xff] }
   0xa   :  { %304 = vmatprep.subr.bf16.mxu0 %v303_v15  ;;  %v329_v37 = vpack.c.bf16 %v141_v33, %v140_v30  ;;  %v331_v38 = vpack.c.bf16 %v159_v35, %v158_v34  ;;  %v143_v40 = vld [vmem:[%s633_s3 + $0x18] sm:$0xff]  ;;  %v160_v41 = vld [vmem:[%s633_s3 + $0xa0] sm:$0xff]  ;;  %v44_v42 = vld [vmem:[%s631_s1 + $0xa8] sm:$0xff] }
   0xb   :  { %v46_v43 = vld [vmem:[%s631_s1 + $0xb8] sm:$0xff]  ;;  %328 = vmatprep.subr.bf16.mxu1 %v327_v32  ;;  %v161_v44 = vld [vmem:[%s633_s3 + $0xa8] sm:$0xff]  ;;  %v333_v45 = vpack.c.bf16 %v143_v40, %v142_v39  ;;  %v43_v47 = vld [vmem:[%s631_s1 + $0xa0] sm:$0xff] }
   0xc   :  { %330 = vmatpush3.bf16.msra.mxu1 %v329_v37  ;;  %v335_v48 = vpack.c.bf16 %v161_v44, %v160_v41  ;;  %v144_v49 = vld [vmem:[%s633_s3 + $0x20] sm:$0xff]  ;;  %v145_v50 = vld [vmem:[%s633_s3 + $0x28] sm:$0xff]  ;;  %v315_v51 = vpack.c.bf16 %v46_v43, %v44_v42  ;;  %v45_v52 = vld [vmem:[%s631_s1 + $0xb0] sm:$0xff] }
   0xd   :  { %306 = vmatpush1.bf16.msra.mxu0 %v305_v20  ;;  %332 = vmatprep.subr.bf16.mxu1 %v331_v38  ;;  %v162_v53 = vld [vmem:[%s633_s3 + $0xb0] sm:$0xff]  ;;  %v163_v54 = vld [vmem:[%s633_s3 + $0xb8] sm:$0xff]  ;;  %v48_v55 = vld [vmem:[%s631_s1 + $0xc8] sm:$0xff]  ;;  %v337_v58 = vpack.c.bf16 %v145_v50, %v144_v49  ;;  %v317_v59 = vpack.c.bf16 %v45_v52, %v43_v47 }
   0xe   :  { %308 = vmatprep.subr.bf16.mxu0 %v307_v21  ;;  %v50_v56 = vld [vmem:[%s631_s1 + $0xd8] sm:$0xff]  ;;  %v47_v57 = vld [vmem:[%s631_s1 + $0xc0] sm:$0xff]  ;;  %v339_v60 = vpack.c.bf16 %v163_v54, %v162_v53  ;;  %v146_v61 = vld [vmem:[%s633_s3 + $0x30] sm:$0xff] }
   0xf   :  { %v147_v62 = vld [vmem:[%s633_s3 + $0x38] sm:$0xff] }
  0x10   :  { %334 = vmatpush3.bf16.msra.mxu1 %v333_v45 }
  0x11   :  { %310 = vmatpush1.bf16.msra.mxu0 %v309_v31  ;;  %336 = vmatprep.subr.bf16.mxu1 %v335_v48 }
  0x12   :  { %312 = vmatprep.subr.bf16.mxu0 %v311_v36 }
  0x15   :  { %314 = vmatpush1.bf16.msra.mxu0 %v313_v46 }
  0x16   :  { %11 = vsyncpa [#allocation4], 0  ;;  %316 = vmatprep.subr.bf16.mxu0 %v315_v51  ;;  %v319_v63 = vpack.c.bf16 %v50_v56, %v48_v55  ;;  %v49_v0 = vld [vmem:[%s631_s1 + $0xd0] sm:$0xff]  ;;  %v164_v1 = vld [vmem:[%s633_s3 + $0xc0] sm:$0xff]  ;;  %338 = vmatpush3.bf16.msra.mxu1 %v337_v58  ;;  %v341_v5 = vpack.c.bf16 %v147_v62, %v146_v61  ;;  %v57_v34 = vlaneseq  ;;  %v173_v48 = vstv %s634_s4  ;;  %s386_s24 = smov [#allocation3]  }
  0x17   :  { %v165_v2 = vld [vmem:[%s633_s3 + $0xc8] sm:$0xff]  ;;  %v54_v4 = vld [vmem:[%s631_s1 + $0xf8] sm:$0xff]  ;;  %v321_v6 = vpack.c.bf16 %v49_v0, %v47_v57  ;;  %v51_v7 = vld [vmem:[%s631_s1 + $0xe0] sm:$0xff]  ;;  %340 = vmatprep.subr.bf16.mxu1 %v339_v60  ;;  %s252_s25 = sshll.u32 %s386_s24, 4  ;;  %vm244_vm0 = vcmask 64512   ;;  %s253_s25 = int_to_ptr.vmem [resolvable:$true] %s252_s25 }
  0x18   :  { %v52_v3 = vld [vmem:[%s631_s1 + $0xe8] sm:$0xff]  ;;  %v343_v8 = vpack.c.bf16 %v165_v2, %v164_v1  ;;  %v148_v9 = vld [vmem:[%s633_s3 + $0x40] sm:$0xff]  ;;  %v53_v12 = vld [vmem:[%s631_s1 + $0xf0] sm:$0xff]  ;;  %v58_v35 = vshrl.u32 %v57_v34, 7  ;;  %p366_p1 = scmp.lt.s32.totalorder %s253_s25, %s253_s25 }
  0x19   :  { %318 = vmatpush1.bf16.msra.mxu0 %v317_v59  ;;  %v149_v10 = vld [vmem:[%s633_s3 + $0x48] sm:$0xff]  ;;  %v323_v11 = vpack.c.bf16 %v54_v4, %v52_v3  ;;  %v166_v13 = vld [vmem:[%s633_s3 + $0xd0] sm:$0xff]  ;;  %v167_v14 = vld [vmem:[%s633_s3 + $0xd8] sm:$0xff]  ;;  %v325_v16 = vpack.c.bf16 %v53_v12, %v51_v7 }
  0x1a   :  { %320 = vmatprep.subr.bf16.mxu0 %v319_v63  ;;  %342 = vmatpush3.bf16.msra.mxu1 %v341_v5  ;;  %v345_v15 = vpack.c.bf16 %v149_v10, %v148_v9  ;;  %v347_v17 = vpack.c.bf16 %v167_v14, %v166_v13  ;;  %v150_v18 = vld [vmem:[%s633_s3 + $0x50] sm:$0xff]  ;;  %v151_v19 = vld [vmem:[%s633_s3 + $0x58] sm:$0xff]  ;;  %v168_v20 = vld [vmem:[%s633_s3 + $0xe0] sm:$0xff]  ;;  %v59_v36 = vsub.s32 0, %v58_v35  ;;  %v63_v38 = vsub.s32 1, %v58_v35 }
  0x1b   :  { %344 = vmatprep.subr.bf16.mxu1 %v343_v8  ;;  %v169_v21 = vld [vmem:[%s633_s3 + $0xe8] sm:$0xff]  ;;  %v349_v22 = vpack.c.bf16 %v151_v19, %v150_v18  ;;  %v22_v23 = vld [vmem:[%s630_s0] sm:$0xff]  ;;  %v170_v28 = vld [vmem:[%s633_s3 + $0xf0] sm:$0xff] }
  0x1c   :  { %v351_v24 = vpack.c.bf16 %v169_v21, %v168_v20  ;;  %v152_v25 = vld [vmem:[%s633_s3 + $0x60] sm:$0xff]  ;;  %v153_v26 = vld [vmem:[%s633_s3 + $0x68] sm:$0xff]  ;;  %v171_v29 = vld [vmem:[%s633_s3 + $0xf8] sm:$0xff] }
  0x1d   :  { %322 = vmatpush1.bf16.msra.mxu0 %v321_v6  ;;  %v353_v27 = vpack.c.bf16 %v153_v26, %v152_v25  ;;  %v355_v30 = vpack.c.bf16 %v171_v29, %v170_v28  ;;  %v154_v31 = vld [vmem:[%s633_s3 + $0x70] sm:$0xff]  ;;  %v155_v32 = vld [vmem:[%s633_s3 + $0x78] sm:$0xff]  ;;  %v55_v37 = vld [vmem:[%s632_s2] sm:$0x3]  ;;  %s361_s2 = scalar_lea.vmem %s253_s25, 128 }
  0x1e   :  { %324 = vmatprep.subr.bf16.mxu0 %v323_v11  ;;  %346 = vmatpush3.bf16.msra.mxu1 %v345_v15  ;;  %v357_v33 = vpack.c.bf16 %v155_v32, %v154_v31  ;;  %v60_v39 = vrot.slane %v55_v37, %v59_v36  ;;  %v64_v40 = vrot.slane %v55_v37, %v63_v38  ;;  %p362_p0 = scmp.ne.s32.totalorder %s253_s25, %s361_s2  ;;  %p367_p2 = scmp.lt.s32.totalorder %s361_s2, %s361_s2 }
  0x1f   :  { %348 = vmatprep.subr.bf16.mxu1 %v347_v17 }
  0x20   :  { %p368_p3 = por %p367_p2, %p366_p1 }
  0x21   :  { %326 = vmatpush1.bf16.msra.mxu0 %v325_v16 }
  0x22   :  { %350 = vmatpush3.bf16.msra.mxu1 %v349_v22  ;;  %p369_p4 = pnand %p368_p3, %p362_p0 }
  0x23   :  { %352 = vmatprep.subr.bf16.mxu1 %v351_v24 }
  0x24   :  { %132 = vmatmul.mubr.f32.vlgmr.msra.gmra.mrb[0].mxu0 %v22_v23 }
  0x26   :  { %354 = vmatpush3.bf16.msra.mxu1 %v353_v27 }
  0x27   :  { %356 = vmatprep.subr.bf16.mxu1 %v355_v30 }
  0x2a   :  { %358 = vmatpush3.bf16.msra.mxu1 %v357_v33 }
  0xf7   :  { %v133_v41 = vpop.f32.mrb[0].mxu0 }
  0xf8   :  { %v134_v42 = vadd.f32 %v133_v41, %v60_v39  ;;  %v135_v43 = vpop.f32.mrb[1].mxu0 }
  0xf9   :  { %v136_v44 = vadd.f32 %v135_v43, %v64_v40 }
  0xfa   :  { %v138_v46 = vmax.f32 %v134_v42, 0.0 }
  0xfb   :  { %v139_v45 = vmax.f32 %v136_v44, 0.0 }
  0xfd   :  { %238 = vmatprep.mubr.f32.mxu1 %v139_v45 }
  0xfe   :  { %239 = vmatmul.mubr.f32.vlgmr.msra.gmra.mrb[0].mxu1 %v138_v46 }
 0x1d1   :  { %v292_v47 = vpop.f32.mrb[0].mxu1 }
 0x1d2   :  { %v293_v49 = vpop.f32.mrb[1].mxu1 }
 0x1d3   :  { %v294_v50 = vadd.f32 %v293_v49, %v292_v47 }
 0x1d5   :  { %v241_v51 = vadd.f32 %v294_v50, %v173_v48 }
 0x1d7   :  { %245 = vst.msk [vmem:[#allocation3] sm:$0xff] %vm244_vm0, %v241_v51 }
 0x1d8   :  { %372 = shalt.err (!%p369_p4)
}
 0x1d9   :  { %s373_s28 = scalar_lea.hbm %s635_s5, 128 }
 0x1da   :  { %p374_p5 = scmp.ne.s32.totalorder %s635_s5, %s373_s28  ;;  %p377_p6 = scmp.lt.u32.totalorder %s373_s28, %s635_s5 }
 0x1dc   :  { %p379_p7 = pnand %p377_p6, %p374_p5 }
 0x1de   :  { %382 = shalt.err (!%p379_p7)
}
 0x1df   :  { %255 = dma.vmem_to_hbm [thread:$0]  %s253_s25, 128, %s635_s5, [#allocation4]  }
 0x1e0   :  { %383 = dma.done.wait [#allocation4], 128  }
 0x1e1   :  { %384 = vsyncadd [#allocation4], 4294967168 }
 0x1e2   :  { %259 = vsyncpa [#allocation4], 1 }

</bundles_post_ra>
